<compile_context>
chip_gen: v5e
topology: v5e:2x2
jax: 0.10.0
libtpu: 0.0.40
codegen_flags: <defaults>
</compile_context>

<pallas_src>
import functools

import jax
import jax.numpy as jnp
from jax import lax
from jax.experimental import pallas as pl
from jax.experimental.pallas import tpu as pltpu

LANES = 128
SUBLANES = 8
ACC_ROWS = 32                          # (32,128) accumulator = 4 independent vadd chains
NSPLIT = 2                             # leading "parallel" grid axis (both TCs on v7x)
DEFAULT_CHUNK_ROWS = 512               # 512*128*4 B = 256 KiB f32 intermediate per chunk
TARGET_BLOCK_BYTES = 12 * 1024 * 1024  # ~12 MiB per input block
VMEM_LIMIT_BYTES = 48 * 1024 * 1024    # explicit limit: safe on v7x (64 MiB physical)


def _round_up(a: int, b: int) -> int:
    return ((a + b - 1) // b) * b


def _sum_kernel(x_ref, o_ref, *, total_rows, block_rows, blocks_per_split, chunk_rows):
    c = pl.program_id(0)   # core-split index ("parallel")
    i = pl.program_id(1)   # streaming/reduction step ("arbitrary")

    @pl.when(i == 0)
    def _():
        o_ref[...] = jnp.zeros_like(o_ref)

    logical_block = c * blocks_per_split + i
    remaining = total_rows - logical_block * block_rows
    n_chunks = block_rows // chunk_rows            # static

    zero_acc = jnp.zeros((ACC_ROWS, LANES), jnp.float32)

    def fold(x):
        # (chunk_rows,128) -> (chunk_rows/32, 32, 128), sum leading axis: pure VPU,
        # no cross-lane XLU reduce, no per-step scalar dependency chain.
        return jnp.sum(x.reshape(-1, ACC_ROWS, LANES), axis=0)

    # Steady-state blocks: cast + accumulate only (no mask work).
    @pl.when(remaining >= block_rows)
    def _():
        def body(k, acc):
            r0 = pl.multiple_of(k * chunk_rows, 32)
            x = x_ref[pl.ds(r0, chunk_rows), :].astype(jnp.float32)
            return acc + fold(x)
        o_ref[...] += lax.fori_loop(0, n_chunks, body, zero_acc)

    # Tail (or clamped out-of-range) block: mask rows past the real data.
    @pl.when(remaining < block_rows)
    def _():
        def body(k, acc):
            r0 = pl.multiple_of(k * chunk_rows, 32)
            x = x_ref[pl.ds(r0, chunk_rows), :].astype(jnp.float32)
            row_ids = r0 + lax.broadcasted_iota(jnp.int32, x.shape, 0)
            x = jnp.where(row_ids < remaining, x, 0.0)
            return acc + fold(x)
        o_ref[...] += lax.fori_loop(0, n_chunks, body, zero_acc)


def _aligned_prefix_sum(x2, rows):
    """Sum of a (rows, 128) lane-major array, accumulated in float32."""
    itemsize = jnp.dtype(x2.dtype).itemsize
    pack = max(SUBLANES, 32 // max(itemsize, 1))       # sublane packing granularity
    gran = max(pack, ACC_ROWS)                         # 32 covers f32/bf16/int8

    chunk_rows = min(DEFAULT_CHUNK_ROWS, _round_up(rows, gran))
    target_rows = max(chunk_rows,
                      (TARGET_BLOCK_BYTES // (LANES * itemsize)) // chunk_rows * chunk_rows)
    block_rows = min(target_rows, _round_up(rows, chunk_rows))

    num_blocks = pl.cdiv(rows, block_rows)
    # Small tensors: single split so the clamped index_map never re-DMAs a block.
    nsplit = NSPLIT if num_blocks >= 2 * NSPLIT else 1
    blocks_per_split = pl.cdiv(num_blocks, nsplit)

    def in_map(c, i):
        # Clamp so the DMA never starts past the array; out-of-range logical
        # blocks are fully masked to zero inside the kernel.
        return (jnp.minimum(c * blocks_per_split + i, num_blocks - 1), 0)

    partials = pl.pallas_call(
        functools.partial(
            _sum_kernel,
            total_rows=rows,
            block_rows=block_rows,
            blocks_per_split=blocks_per_split,
            chunk_rows=chunk_rows,
        ),
        out_shape=jax.ShapeDtypeStruct((nsplit * ACC_ROWS, LANES), jnp.float32),
        grid=(nsplit, blocks_per_split),
        in_specs=[pl.BlockSpec((block_rows, LANES), in_map)],
        out_specs=pl.BlockSpec((ACC_ROWS, LANES), lambda c, i: (c, 0)),
        compiler_params=pltpu.CompilerParams(
            dimension_semantics=("parallel", "arbitrary"),
            vmem_limit_bytes=VMEM_LIMIT_BYTES),
        cost_estimate=pl.CostEstimate(
            flops=rows * LANES,
            transcendentals=0,
            bytes_accessed=rows * LANES * itemsize + nsplit * ACC_ROWS * LANES * 4),
    )(x2)

    # Combine the tiny (nsplit*32, 128) per-split lane partials in the wrapper.
    return jnp.sum(partials)


def _full_reduce(x, do_mean: bool):
    flat = x.reshape(-1)
    n = flat.shape[0]
    if n == 0:
        # torch.sum(empty) == 0, torch.mean(empty) == nan.
        return jnp.array(jnp.nan if do_mean else 0.0, dtype=jnp.float32)

    rows = n // LANES
    tail = n - rows * LANES

    total = jnp.float32(0.0)
    if rows > 0:
        # Aligned case (tail == 0): the original buffer streams straight into the
        # kernel with no copy. Ragged case: only a prefix slice, never a full pad.
        prefix = flat if tail == 0 else flat[: rows * LANES]
        total = _aligned_prefix_sum(prefix.reshape(rows, LANES), rows)
    if tail > 0:
        total = total + jnp.sum(flat[rows * LANES:].astype(jnp.float32))

    if do_mean:
        total = total / jnp.float32(n)
    return total


class Reducer:
    """Pallas equivalent of src/losses.py::Reducer (stateless, no params)."""

    def __init__(self, reduction: str):
        self.reduction = reduction

    def __call__(self, inputs):
        match self.reduction:
            case 'none':
                # Reference calls torch.identity (nonexistent); intended behavior
                # is a pass-through -> return the input directly (no copy kernel).
                return inputs
            case 'mean':
                return _full_reduce(inputs, do_mean=True)
            case 'sum':
                return _full_reduce(inputs, do_mean=False)
            case _:
                raise ValueError(f"unknown reduction: {self.reduction}")


if __name__ == "__main__":
    key = jax.random.PRNGKey(0)
    x = jax.random.normal(key, (2, 4, 16, 16), dtype=jnp.float32)

    sum_out = jax.block_until_ready(Reducer('sum')(x))
    mean_out = jax.block_until_ready(Reducer('mean')(x))
    none_out = jax.block_until_ready(Reducer('none')(x))

    assert jnp.allclose(sum_out, jnp.sum(x), rtol=1e-5, atol=1e-4)
    assert jnp.allclose(mean_out, jnp.mean(x), rtol=1e-5, atol=1e-6)
    assert none_out.shape == x.shape and none_out.dtype == x.dtype
    assert jnp.array_equal(none_out, x)

    # Multi-chunk, unmasked steady-state path (full blocks).
    m = jax.random.normal(jax.random.PRNGKey(2), (256, 1024), dtype=jnp.float32)
    m_sum = jax.block_until_ready(Reducer('sum')(m))
    assert jnp.allclose(m_sum, jnp.sum(m), rtol=1e-5, atol=1e-2)

    # Ragged rows + <128-element tail path (prefix kernel + wrapper tail sum).
    r = jax.random.normal(jax.random.PRNGKey(3), (3, 130), dtype=jnp.float32)
    r_mean = jax.block_until_ready(Reducer('mean')(r))
    assert jnp.allclose(r_mean, jnp.mean(r), rtol=1e-5, atol=1e-6)

    # Tail-only path + in-kernel dtype handling skipped entirely (bf16, 105 elems).
    y = jax.random.normal(jax.random.PRNGKey(1), (3, 5, 7), dtype=jnp.bfloat16)
    y_sum = jax.block_until_ready(Reducer('sum')(y))
    assert jnp.allclose(y_sum, jnp.sum(y.astype(jnp.float32)), rtol=1e-2, atol=1e-2)

    print("KERNEL_OK")
</pallas_src>

<mosaic_0001>
module attributes {stable_mosaic.version = 11 : i64} {
  func.func @_sum_kernel(%arg0: i32, %arg1: i32, %arg2: memref<32x128xf32, #tpu.memory_space<vmem>>, %arg3: memref<32x128xf32, #tpu.memory_space<vmem>>) attributes {dimension_semantics = [#tpu.dimension_semantics<parallel>, #tpu.dimension_semantics<arbitrary>], iteration_bounds = array<i64: 1, 1>, scalar_prefetch = 0 : i64, scratch_operands = 0 : i64, tpu.core_type = #tpu.core_type<tc>, window_params = [{transform_indices = @transform_0, window_bounds = array<i64: 32, 128>}, {transform_indices = @transform_1, window_bounds = array<i64: 32, 128>}]} {
    %c0_i32 = arith.constant 0 : i32
    %0 = arith.cmpi eq, %arg1, %c0_i32 : i32
    %1 = arith.extui %0 : i1 to i32
    %c0_i32_0 = arith.constant 0 : i32
    %2 = arith.cmpi ne, %1, %c0_i32_0 : i32
    scf.if %2 {
      %cst_5 = arith.constant 0.000000e+00 : f32
      %14 = vector.broadcast %cst_5 : f32 to vector<32x128xf32>
      %c0 = arith.constant 0 : index
      %c0_6 = arith.constant 0 : index
      %15 = vector.load %arg3[%c0, %c0_6] : memref<32x128xf32, #tpu.memory_space<vmem>>, vector<32x128xf32>
      tpu.vector_store %arg3[%c0, %c0_6], %14 {strides = array<i32>} : memref<32x128xf32, #tpu.memory_space<vmem>>, vector<32x128xf32>,
    } else {
    }
    %c1_i32 = arith.constant 1 : i32
    %3 = arith.muli %arg0, %c1_i32 : i32
    %4 = arith.addi %3, %arg1 : i32
    %c32_i32 = arith.constant 32 : i32
    %5 = arith.muli %4, %c32_i32 : i32
    %c16_i32 = arith.constant 16 : i32
    %6 = arith.subi %c16_i32, %5 : i32
    %cst = arith.constant 0.000000e+00 : f32
    %7 = vector.broadcast %cst : f32 to vector<32x128xf32>
    %c32_i32_1 = arith.constant 32 : i32
    %8 = arith.cmpi sge, %6, %c32_i32_1 : i32
    %9 = arith.extui %8 : i1 to i32
    %c0_i32_2 = arith.constant 0 : i32
    %10 = arith.cmpi ne, %9, %c0_i32_2 : i32
    scf.if %10 {
      %c0 = arith.constant 0 : index
      %c0_5 = arith.constant 0 : index
      %14 = vector.load %arg3[%c0, %c0_5] : memref<32x128xf32, #tpu.memory_space<vmem>>, vector<32x128xf32>
      %c0_i32_6 = arith.constant 0 : i32
      %c32_i32_7 = arith.constant 32 : i32
      %15 = arith.muli %c0_i32_6, %c32_i32_7 : i32
      %16 = tpu.assume_multiple %15, 32 : i32
      %17 = arith.index_cast %16 : i32 to index
      %c0_8 = arith.constant 0 : index
      %18 = vector.load %arg2[%17, %c0_8] : memref<32x128xf32, #tpu.memory_space<vmem>>, vector<32x128xf32>
      %19 = vector.shape_cast %18 : vector<32x128xf32> to vector<1x32x128xf32>
      %cst_9 = arith.constant dense<0.000000e+00> : vector<32x128xf32>
      %20 = vector.multi_reduction <add>, %19, %cst_9 [0] : vector<1x32x128xf32> to vector<32x128xf32>
      %21 = arith.addf %7, %20 : vector<32x128xf32>
      %c1_i32_10 = arith.constant 1 : i32
      %22 = arith.addf %14, %21 : vector<32x128xf32>
      %c0_11 = arith.constant 0 : index
      %c0_12 = arith.constant 0 : index
      %23 = vector.load %arg3[%c0_11, %c0_12] : memref<32x128xf32, #tpu.memory_space<vmem>>, vector<32x128xf32>
      tpu.vector_store %arg3[%c0_11, %c0_12], %22 {strides = array<i32>} : memref<32x128xf32, #tpu.memory_space<vmem>>, vector<32x128xf32>,
    } else {
    }
    %c32_i32_3 = arith.constant 32 : i32
    %11 = arith.cmpi slt, %6, %c32_i32_3 : i32
    %12 = arith.extui %11 : i1 to i32
    %c0_i32_4 = arith.constant 0 : i32
    %13 = arith.cmpi ne, %12, %c0_i32_4 : i32
    scf.if %13 {
      %c0 = arith.constant 0 : index
      %c0_5 = arith.constant 0 : index
      %14 = vector.load %arg3[%c0, %c0_5] : memref<32x128xf32, #tpu.memory_space<vmem>>, vector<32x128xf32>
      %c0_i32_6 = arith.constant 0 : i32
      %c32_i32_7 = arith.constant 32 : i32
      %15 = arith.muli %c0_i32_6, %c32_i32_7 : i32
      %16 = tpu.assume_multiple %15, 32 : i32
      %17 = arith.index_cast %16 : i32 to index
      %c0_8 = arith.constant 0 : index
      %18 = vector.load %arg2[%17, %c0_8] : memref<32x128xf32, #tpu.memory_space<vmem>>, vector<32x128xf32>
      %19 = tpu.iota {dimensions = array<i32: 0>} : vector<32x128xi32>
      %20 = vector.broadcast %16 : i32 to vector<32x128xi32>
      %21 = arith.addi %20, %19 : vector<32x128xi32>
      %22 = vector.broadcast %6 : i32 to vector<32x128xi32>
      %23 = arith.cmpi slt, %21, %22 : vector<32x128xi32>
      %cst_9 = arith.constant 0.000000e+00 : f32
      %24 = vector.broadcast %cst_9 : f32 to vector<32x128xf32>
      %25 = arith.select %23, %18, %24 : vector<32x128xi1>, vector<32x128xf32>
      %26 = vector.shape_cast %25 : vector<32x128xf32> to vector<1x32x128xf32>
      %cst_10 = arith.constant dense<0.000000e+00> : vector<32x128xf32>
      %27 = vector.multi_reduction <add>, %26, %cst_10 [0] : vector<1x32x128xf32> to vector<32x128xf32>
      %28 = arith.addf %7, %27 : vector<32x128xf32>
      %c1_i32_11 = arith.constant 1 : i32
      %29 = arith.addf %14, %28 : vector<32x128xf32>
      %c0_12 = arith.constant 0 : index
      %c0_13 = arith.constant 0 : index
      %30 = vector.load %arg3[%c0_12, %c0_13] : memref<32x128xf32, #tpu.memory_space<vmem>>, vector<32x128xf32>
      tpu.vector_store %arg3[%c0_12, %c0_13], %29 {strides = array<i32>} : memref<32x128xf32, #tpu.memory_space<vmem>>, vector<32x128xf32>,
    } else {
    }
    return
  }
  func.func @transform_0(%arg0: i32, %arg1: i32) -> (i32, i32) {
    %c1_i32 = arith.constant 1 : i32
    %0 = arith.muli %arg0, %c1_i32 : i32
    %1 = arith.addi %0, %arg1 : i32
    %c0_i32 = arith.constant 0 : i32
    %2 = arith.minsi %1, %c0_i32 : i32
    %c0_i32_0 = arith.constant 0 : i32
    %c0_i32_1 = arith.constant 0 : i32
    return %2, %c0_i32_0 : i32, i32
  }
  func.func @transform_1(%arg0: i32, %arg1: i32) -> (i32, i32) {
    %c0_i32 = arith.constant 0 : i32
    %c0_i32_0 = arith.constant 0 : i32
    return %arg0, %c0_i32 : i32, i32
  }
}

</mosaic_0001>

<bundles_post_ra>
// kernel: tpu_custom_call.1
= control target key start
LH: loop header
LB: loop body
LE: loop exit
PB: predicated region body
PF: predicated region fallthrough
CT: control target
= control target key end

     0   :  { %6 = vsyncpa [#allocation3], 0  ;;  %s227_s0 = inlined_call_operand.hbm [shape: f32[16,128], index: 0, kind: input, shape index: {}]   ;;  %s228_s1 = inlined_call_operand.hbm [shape: f32[32,128], index: 1, kind: output, shape index: {}]  }
   0x1   :  { %7 = vsyncpa [#allocation4], 0 }
   0x2   :  { %18 = vsyncadd [#allocation3], 256  ;;  %s23_s8 = sshll.u32 %s227_s0, 4  ;;  %s206_s9 = smov [#allocation2]   ;;  %s24_s8 = int_to_ptr.hbm [resolvable:$true] %s23_s8 }
   0x3   :  { %s25_s10 = sshll.u32 %s206_s9, 4  ;;  %s207_s11 = smov 128   ;;  %s26_s10 = int_to_ptr.vmem [resolvable:$true] %s25_s10 }
   0x4   :  { %s208_s12 = smov 8  }
   0x5   :  { %31 = dma.hbm_to_vmem [thread:$0]  %s24_s8, 256, %s26_s10, [#allocation3], %s207_s11, %s207_s11, %s208_s12  }
   0x6   :  { %202 = dma.done.wait [#allocation3], 512  }
   0x7   :  { %203 = vsyncadd [#allocation3], 4294966784  ;;  %v209_v0 = vmov 0.0   ;;  %s210_s13 = smov [#allocation5]   ;;  %s134_s17 = sshll.u32 %s228_s1, 4  ;;  %v89_v1 = vld [vmem:[#allocation2] sm:$0xff]  ;;  %s135_s17 = int_to_ptr.hbm [resolvable:$true] %s134_s17 }
   0x8   :  { %126 = vst [vmem:[#allocation5 + $0x10] sm:$0xff] %v209_v0  ;;  %s132_s14 = sshll.u32 %s210_s13, 4  ;;  %v90_v2 = vld [vmem:[#allocation2 + $0x8] sm:$0xff]  ;;  %s133_s14 = int_to_ptr.vmem [resolvable:$true] %s132_s14 }
   0x9   :  { %127 = vst [vmem:[#allocation5 + $0x18] sm:$0xff] %v209_v0 }
   0xa   :  { %124 = vst [vmem:[#allocation5] sm:$0xff] %v89_v1 }
   0xb   :  { %125 = vst [vmem:[#allocation5 + $0x8] sm:$0xff] %v90_v2 }
   0xc   :  { %140 = dma.vmem_to_hbm [thread:$0]  %s133_s14, 512, %s135_s17, [#allocation4], %s207_s11, %s207_s11, %s208_s12  }
   0xd   :  { %204 = dma.done.wait [#allocation4], 512  }
   0xe   :  { %205 = vsyncadd [#allocation4], 4294966784 }
   0xf   :  { %145 = vsyncpa [#allocation3], 1 }
  0x10   :  { %146 = vsyncpa [#allocation4], 1 }

</bundles_post_ra>
